<compile_context>
chip_gen: v5e
topology: v5e:2x2
jax: 0.10.0
libtpu: 0.0.40
codegen_flags: <defaults>
</compile_context>

<pallas_src>
import functools
import math

import jax
import jax.numpy as jnp
from jax.experimental import pallas as pl
from jax.experimental.pallas import tpu as pltpu


def _longrope_kernel_general(pos_ref, invf_ref, cos_ref, sin_ref, *,
                             scaling_factor):
    # pos_ref:          (s_tile, 1)   f32 positions for this (batch, seq-tile)
    # invf_ref:         (1, half)     f32 precomputed inv_freq (grid constant)
    # cos_ref/sin_ref:  (s_tile, dim) output tiles in x.dtype
    freqs = pos_ref[...] * invf_ref[...]                 # (s_tile, half) f32
    c = jnp.cos(freqs)
    s = jnp.sin(freqs)
    if scaling_factor != 1.0:                            # build-time skip
        c = c * scaling_factor
        s = s * scaling_factor
    c = c.astype(cos_ref.dtype)
    s = s.astype(sin_ref.dtype)
    # emb = concat([freqs, freqs], -1): duplicate along lanes (XLU) and issue
    # a single full-width, unmasked store per output.
    cos_ref[...] = jnp.concatenate([c, c], axis=-1)
    sin_ref[...] = jnp.concatenate([s, s], axis=-1)


def _longrope_kernel_arange(invf_ref, cos_ref, sin_ref, *, s_tile,
                            scaling_factor):
    # Positions synthesised in-kernel: rows of position_ids are arange(S).
    base = pl.program_id(0) * s_tile
    pos_i = base + jax.lax.broadcasted_iota(jnp.int32, (s_tile, 1), 0)
    pos = pos_i.astype(jnp.float32)                      # (s_tile, 1) f32
    freqs = pos * invf_ref[...]                          # (s_tile, half) f32
    c = jnp.cos(freqs)
    s = jnp.sin(freqs)
    if scaling_factor != 1.0:
        c = c * scaling_factor
        s = s * scaling_factor
    c = c.astype(cos_ref.dtype)
    s = s.astype(sin_ref.dtype)
    cos_ref[...] = jnp.concatenate([c, c], axis=-1)
    sin_ref[...] = jnp.concatenate([s, s], axis=-1)


def phi3_longrope_scaled_rotary_embedding(x, position_ids, *, dim, base,
                                          long_factor,
                                          max_position_embeddings,
                                          original_max_position_embeddings,
                                          seq_tile=1024,
                                          positions_are_arange=False):
    """Returns (cos, sin), each (B, S, dim) in x.dtype.

    `positions_are_arange=True` is a fast path for the common case where every
    row of position_ids equals arange(S) starting at 0.
    """
    B, S = position_ids.shape
    half = dim // 2
    out_dtype = x.dtype
    dtype_bytes = jnp.dtype(out_dtype).itemsize

    # __init__ buffers + the forward's inv_freq (per-call constant, hoisted
    # out of the kernel so it is not recomputed at every grid step).
    # NOTE: the reference module's forward only ever uses long_factor; the
    # short/long selection lives outside this forward.
    ext_factors = jnp.asarray(long_factor, dtype=jnp.float32)
    inv_freq_shape = jnp.arange(0, dim, 2, dtype=jnp.float32) / dim
    inv_freq = (1.0 / (ext_factors * base ** inv_freq_shape)).reshape(1, half)

    # Static scalar scaling factor (pure Python math, as in the module).
    scale = max_position_embeddings / original_max_position_embeddings
    scaling_factor = (1.0 if scale <= 1.0 else
                      math.sqrt(1 + math.log(scale) /
                                math.log(original_max_position_embeddings)))
    scaling_factor = float(scaling_factor)

    s_tile = min(S, seq_tile)
    # v7x has 2 TensorCores: make sure the parallel grid has >= 2 steps when
    # there is enough work to split.
    n_par = (1 if positions_are_arange else B) * pl.cdiv(S, s_tile)
    if n_par < 2 and S >= 16:
        s_tile = max(8, (((S + 1) // 2) + 7) // 8 * 8)

    if positions_are_arange:
        # TODO(synk): this path assumes every row of position_ids is
        # arange(S) starting at 0 (prefill); arbitrary offsets use the
        # general path below.
        kernel = functools.partial(_longrope_kernel_arange, s_tile=s_tile,
                                   scaling_factor=scaling_factor)
        cost = pl.CostEstimate(
            flops=S * half,
            transcendentals=2 * S * half,
            bytes_accessed=2 * S * dim * dtype_bytes + half * 4)
        cos1, sin1 = pl.pallas_call(
            kernel,
            out_shape=(jax.ShapeDtypeStruct((S, dim), out_dtype),
                       jax.ShapeDtypeStruct((S, dim), out_dtype)),
            grid=(pl.cdiv(S, s_tile),),
            in_specs=[pl.BlockSpec((1, half), lambda s: (0, 0))],
            out_specs=(pl.BlockSpec((s_tile, dim), lambda s: (s, 0)),
                       pl.BlockSpec((s_tile, dim), lambda s: (s, 0))),
            compiler_params=pltpu.CompilerParams(
                dimension_semantics=("parallel",)),
            cost_estimate=cost,
        )(inv_freq)
        cos = jnp.broadcast_to(cos1[None], (B, S, dim))
        sin = jnp.broadcast_to(sin1[None], (B, S, dim))
        return cos, sin

    # General path: arbitrary per-batch positions.
    pos_f = position_ids.astype(jnp.float32).reshape(B, S, 1)
    kernel = functools.partial(_longrope_kernel_general,
                               scaling_factor=scaling_factor)
    cost = pl.CostEstimate(
        flops=B * S * half,
        transcendentals=2 * B * S * half,
        bytes_accessed=2 * B * S * dim * dtype_bytes + B * S * 4 + half * 4)
    cos, sin = pl.pallas_call(
        kernel,
        out_shape=(jax.ShapeDtypeStruct((B, S, dim), out_dtype),
                   jax.ShapeDtypeStruct((B, S, dim), out_dtype)),
        grid=(B, pl.cdiv(S, s_tile)),
        in_specs=[
            pl.BlockSpec((None, s_tile, 1), lambda b, s: (b, s, 0)),
            pl.BlockSpec((1, half), lambda b, s: (0, 0)),
        ],
        out_specs=(
            pl.BlockSpec((None, s_tile, dim), lambda b, s: (b, s, 0)),
            pl.BlockSpec((None, s_tile, dim), lambda b, s: (b, s, 0)),
        ),
        compiler_params=pltpu.CompilerParams(
            dimension_semantics=("parallel", "parallel")),
        cost_estimate=cost,
    )(pos_f, inv_freq)
    return cos, sin


def _reference(x, position_ids, *, dim, base, long_factor,
               max_position_embeddings, original_max_position_embeddings):
    ext = jnp.asarray(long_factor, jnp.float32)
    inv_freq_shape = jnp.arange(0, dim, 2, dtype=jnp.float32) / dim
    inv_freq = 1.0 / (ext * base ** inv_freq_shape)
    freqs = position_ids.astype(jnp.float32)[:, :, None] * inv_freq[None, None, :]
    emb = jnp.concatenate([freqs, freqs], axis=-1)
    scale = max_position_embeddings / original_max_position_embeddings
    sf = 1.0 if scale <= 1.0 else math.sqrt(
        1 + math.log(scale) / math.log(original_max_position_embeddings))
    return (jnp.cos(emb) * sf).astype(x.dtype), (jnp.sin(emb) * sf).astype(x.dtype)


if __name__ == "__main__":
    key = jax.random.PRNGKey(0)
    B, S, dim = 2, 8, 32
    half = dim // 2
    base = 10000.0
    max_position_embeddings = 8192
    original_max_position_embeddings = 4096
    # Deterministic "long_factor" (config.rope_scaling['long_factor']), dim//2 entries.
    long_factor = [1.0 + 0.1 * i for i in range(half)]

    x = jax.random.normal(key, (B, S, dim), dtype=jnp.float32)
    position_ids = jnp.broadcast_to(
        jnp.arange(S, dtype=jnp.int32)[None, :], (B, S))

    cos_ref, sin_ref = _reference(
        x, position_ids, dim=dim, base=base, long_factor=long_factor,
        max_position_embeddings=max_position_embeddings,
        original_max_position_embeddings=original_max_position_embeddings)

    # General path (arbitrary per-batch positions).
    cos, sin = phi3_longrope_scaled_rotary_embedding(
        x, position_ids, dim=dim, base=base, long_factor=long_factor,
        max_position_embeddings=max_position_embeddings,
        original_max_position_embeddings=original_max_position_embeddings,
        positions_are_arange=False)
    jax.block_until_ready((cos, sin))
    assert jnp.allclose(cos, cos_ref, atol=1e-5, rtol=1e-5)
    assert jnp.allclose(sin, sin_ref, atol=1e-5, rtol=1e-5)

    # Fast path (broadcast-arange positions; drops pos input and batch axis).
    cos_a, sin_a = phi3_longrope_scaled_rotary_embedding(
        x, position_ids, dim=dim, base=base, long_factor=long_factor,
        max_position_embeddings=max_position_embeddings,
        original_max_position_embeddings=original_max_position_embeddings,
        positions_are_arange=True)
    jax.block_until_ready((cos_a, sin_a))
    assert jnp.allclose(cos_a, cos_ref, atol=1e-5, rtol=1e-5)
    assert jnp.allclose(sin_a, sin_ref, atol=1e-5, rtol=1e-5)

    print("KERNEL_OK")
</pallas_src>

<mosaic_0001>
module attributes {stable_mosaic.version = 11 : i64} {
  func.func @_longrope_kernel_general(%arg0: i32, %arg1: i32, %arg2: memref<1x8x1xf32, #tpu.memory_space<vmem>>, %arg3: memref<1x16xf32, #tpu.memory_space<vmem>>, %arg4: memref<1x8x32xf32, #tpu.memory_space<vmem>>, %arg5: memref<1x8x32xf32, #tpu.memory_space<vmem>>) attributes {dimension_semantics = [#tpu.dimension_semantics<parallel>, #tpu.dimension_semantics<parallel>], iteration_bounds = array<i64: 2, 1>, scalar_prefetch = 0 : i64, scratch_operands = 0 : i64, tpu.core_type = #tpu.core_type<tc>, window_params = [{transform_indices = @transform_0, window_bounds = array<i64: 1, 8, 1>}, {pipeline_mode = #tpu.pipeline_mode<synchronous>, transform_indices = @transform_1, window_bounds = array<i64: 1, 16>}, {transform_indices = @transform_2, window_bounds = array<i64: 1, 8, 32>}, {transform_indices = @transform_3, window_bounds = array<i64: 1, 8, 32>}]} {
    %c0 = arith.constant 0 : index
    %c0_0 = arith.constant 0 : index
    %c0_1 = arith.constant 0 : index
    %0 = vector.load %arg2[%c0, %c0_0, %c0_1] : memref<1x8x1xf32, #tpu.memory_space<vmem>>, vector<1x8x1xf32>
    %1 = vector.shape_cast %0 : vector<1x8x1xf32> to vector<8x1xf32>
    %c0_2 = arith.constant 0 : index
    %c0_3 = arith.constant 0 : index
    %2 = vector.load %arg3[%c0_2, %c0_3] : memref<1x16xf32, #tpu.memory_space<vmem>>, vector<1x16xf32>
    %3 = vector.broadcast %1 : vector<8x1xf32> to vector<8x16xf32>
    %4 = vector.broadcast %2 : vector<1x16xf32> to vector<8x16xf32>
    %5 = arith.mulf %3, %4 : vector<8x16xf32>
    %6 = math.cos %5 : vector<8x16xf32>
    %7 = math.sin %5 : vector<8x16xf32>
    %cst = arith.constant 1.040833 : f32
    %8 = vector.broadcast %cst : f32 to vector<8x16xf32>
    %9 = arith.mulf %6, %8 : vector<8x16xf32>
    %cst_4 = arith.constant 1.040833 : f32
    %10 = vector.broadcast %cst_4 : f32 to vector<8x16xf32>
    %11 = arith.mulf %7, %10 : vector<8x16xf32>
    %12 = tpu.concatenate %9, %9 in 1 : vector<8x16xf32>, vector<8x16xf32> -> vector<8x32xf32>
    %c0_5 = arith.constant 0 : index
    %c0_6 = arith.constant 0 : index
    %c0_7 = arith.constant 0 : index
    %13 = vector.load %arg4[%c0_5, %c0_6, %c0_7] : memref<1x8x32xf32, #tpu.memory_space<vmem>>, vector<1x8x32xf32>
    %14 = vector.shape_cast %13 : vector<1x8x32xf32> to vector<8x32xf32>
    %15 = vector.shape_cast %12 : vector<8x32xf32> to vector<1x8x32xf32>
    tpu.vector_store %arg4[%c0_5, %c0_6, %c0_7], %15 {strides = array<i32>} : memref<1x8x32xf32, #tpu.memory_space<vmem>>, vector<1x8x32xf32>,
    %16 = tpu.concatenate %11, %11 in 1 : vector<8x16xf32>, vector<8x16xf32> -> vector<8x32xf32>
    %c0_8 = arith.constant 0 : index
    %c0_9 = arith.constant 0 : index
    %c0_10 = arith.constant 0 : index
    %17 = vector.load %arg5[%c0_8, %c0_9, %c0_10] : memref<1x8x32xf32, #tpu.memory_space<vmem>>, vector<1x8x32xf32>
    %18 = vector.shape_cast %17 : vector<1x8x32xf32> to vector<8x32xf32>
    %19 = vector.shape_cast %16 : vector<8x32xf32> to vector<1x8x32xf32>
    tpu.vector_store %arg5[%c0_8, %c0_9, %c0_10], %19 {strides = array<i32>} : memref<1x8x32xf32, #tpu.memory_space<vmem>>, vector<1x8x32xf32>,
    return
  }
  func.func @transform_0(%arg0: i32, %arg1: i32) -> (i32, i32, i32) {
    %c0_i32 = arith.constant 0 : i32
    %c0_i32_0 = arith.constant 0 : i32
    return %arg0, %arg1, %c0_i32 : i32, i32, i32
  }
  func.func @transform_1(%arg0: i32, %arg1: i32) -> (i32, i32) {
    %c0_i32 = arith.constant 0 : i32
    %c0_i32_0 = arith.constant 0 : i32
    %c0_i32_1 = arith.constant 0 : i32
    return %c0_i32, %c0_i32_0 : i32, i32
  }
  func.func @transform_2(%arg0: i32, %arg1: i32) -> (i32, i32, i32) {
    %c0_i32 = arith.constant 0 : i32
    %c0_i32_0 = arith.constant 0 : i32
    return %arg0, %arg1, %c0_i32 : i32, i32, i32
  }
  func.func @transform_3(%arg0: i32, %arg1: i32) -> (i32, i32, i32) {
    %c0_i32 = arith.constant 0 : i32
    %c0_i32_0 = arith.constant 0 : i32
    return %arg0, %arg1, %c0_i32 : i32, i32, i32
  }
}

</mosaic_0001>

<bundles_post_ra>
// kernel: tpu_custom_call.1
= control target key start
LH: loop header
LB: loop body
LE: loop exit
PB: predicated region body
PF: predicated region fallthrough
CT: control target
= control target key end

     0   :  { %9 = vsyncpa [#allocation3], 0  ;;  %s1100_s0 = inlined_call_operand.vmem [shape: f32[2,8,1], index: 0, kind: input, shape index: {}]   ;;  %s1101_s1 = inlined_call_operand.vmem [shape: f32[1,16], index: 1, kind: input, shape index: {}]   ;;  %s1102_s2 = inlined_call_operand.hbm [shape: f32[2,8,32], index: 2, kind: output, shape index: {0}]   ;;  %s1103_s3 = inlined_call_operand.hbm [shape: f32[2,8,32], index: 3, kind: output, shape index: {1}]  }
   0x1   :  { %11 = vsyncpa [#allocation3 + $0x1], 0 }
   0x2   :  { %12 = vsyncpa [#allocation5], 0 }
   0x3   :  { %14 = vsyncpa [#allocation5 + $0x1], 0  ;;  %s912_s12 = smov 0   ;;  %s914_s13 = smov 0  }
   0x4   :  { %s916_s14 = smov 0   ;;  %s918_s15 = smov 0  }
   0x5   :  { %s920_s16 = smov 0   ;;  %s922_s17 = smov 0  }
   0x6 LB: > { %s682_s18 = sadd.s32 4294967295, %s882_s17   ;;  %s683_s19 = sadd.s32 4294967294, %s882_s17   ;;  %s882_s17 = sphi %s922_s17, %s20_s17   ;;  %s878_s16 = sphi %s920_s16, %s1110_s16   ;;  %s874_s15 = sphi %s918_s15, %s1109_s15   ;;  %s870_s14 = sphi %s916_s14, %s1108_s14   ;;  %s866_s13 = sphi %s914_s13, %s1107_s13   ;;  %s862_s12 = sphi %s912_s12, %s1106_s12  }
   0x7   : > { %s32_s20 = sadd.s32 1, %s878_s16  ;;  %s90_s21 = sadd.s32 1, %s870_s14 }
   0x8   : > { %p34_p0 = scmp.ge.s32.totalorder %s32_s20, 2  ;;  %p100_p1 = scmp.ne.s32.totalorder %s870_s14, %s866_s13 }
   0x9   : > { %p101_p2 = scmp.eq.s32.totalorder %s682_s18, 1  ;;  %p106_p3 = scmp.ne.s32.totalorder %s866_s13, %s862_s12 }
   0xa   : > { %s1112_s20 = smov (%p34_p0, %s32_s20), 0  ;;  %p107_p5 = scmp.eq.s32.totalorder %s683_s19, 1 }
   0xb   : > { %p952_p4 = por %p101_p2, %p100_p1  ;;  %s85_s23 = ssub.s32 %s878_s16, %s1112_s20 }
   0xc   : > { %p686_p6 = scmp.ge.s32.totalorder %s882_s17, 1  ;;  %p88_p7 = scmp.eq.s32.totalorder %s85_s23, 0 }
   0xd   : > { %p959_p8 = por %p107_p5, %p106_p3  ;;  %p166_p9 = scmp.lt.s32.totalorder %s882_s17, 3 }
   0xe   : > { %s965_s25 = scalar_select %p88_p7, %s870_s14, %s90_s21  }
   0xf   : > { %p167_p10 = pnand %p686_p6, %p166_p9 }
  0x10   : > { %p197_p11 = scmp.lt.s32.totalorder (!%p167_p10), %s874_s15, 1  ;;  %s891_s6 = smov (!%p167_p10), 16  }
  0x11   : > { %170 = sbr.rel (%p167_p10) target bundleno = 373 (0x175), region = 28  ;;  %s1037_s7 = sand.u32 (!%p167_p10), 1, %s866_s13  }
  0x12   : > { %s687_s8 = sshll.u32 (!%p167_p10), %s1037_s7, 3  ;;  %s698_s9 = sshll.u32 (!%p167_p10), %s874_s15, 3 }
  0x13   : > { %s557_s18 = scalar_lea.hbm (!%p167_p10), %s1102_s2, %s698_s9  ;;  %s572_s23 = scalar_lea.hbm (!%p167_p10), %s1103_s3, %s698_s9 }
  0x14   : > { %s561_s28 = sshll.u32 (!%p167_p10), %s557_s18, 4  ;;  %s196_s29 = scalar_lea.vmem (!%p167_p10), [#allocation4], %s687_s8  ;;  %s562_s28 = int_to_ptr.hbm [resolvable:$true] %s561_s28 }
  0x15   : > { %s576_s4 = sshll.u32 (!%p167_p10), %s572_s23, 4  ;;  %s786_s5 = sshra.s32 (!%p167_p10), %s562_s28, 4  ;;  %s1049_s4 = int_to_ptr.hbm [resolvable:$true] %s576_s4  ;;  %s787_s5 = int_to_ptr.hbm [resolvable:$true] %s786_s5 }
  0x16   : > { %v884_v0 = vmov 0   ;;  %s198_s26 = scalar_select %p197_p11, %s874_s15, 1  ;;  %v771_v2 = vld [vmem:[%s1101_s1] ss:$0 sm:$0xff]  ;;  %v885_v16 = vmov 683565275  }
  0x17   : > { %770 = vset.pattern.permute.xlu0 %v884_v0  ;;  %v886_v18 = vmov 2475754826   ;;  %v887_v21 = vmov 2131351028   ;;  %v888_v24 = vmov 2102212464   ;;  %p793_p1 = scmp.lt.s32.totalorder %s787_s5, %s1102_s2 }
  0x18   : > { %s689_s27 = sshll.u32 %s198_s26, 3  ;;  %v889_v27 = vmov 920167782   ;;  %v890_v30 = vmov 1326507024   ;;  %s189_s26 = scalar_lea.vmem [#allocation2], %s687_s8 }
  0x19   : > { %s203_s30 = scalar_lea.vmem %s1100_s0, %s689_s27  ;;  %s559_s27 = sshll.u32 %s189_s26, 4  ;;  %s560_s27 = int_to_ptr.vmem [resolvable:$true] %s559_s27 }
  0x1a   : > { %v204_v1 = vld [vmem:[%s203_s30] sm:$0xff]  ;;  %s574_s30 = sshll.u32 %s196_s29, 4  ;;  %s541_s15 = scalar_lea.sflag [#allocation3], %s1037_s7  ;;  %s1047_s30 = int_to_ptr.vmem [resolvable:$true] %s574_s30 }
  0x1b   : > { %208 = vperm.xlu0 %770, %v204_v1   ;;  %s792_s10 = scalar_lea.hbm %s1102_s2, 16 }
  0x8d   : > { %v209_v3 = vpop.permute.xlu0 %208 }
  0x8e   : > { %v976_v4 = vmul.f32 %v771_v2, %v209_v3 }
  0x90   : > { %v218_v5 = vand.u32 2139095040, %v976_v4  ;;  %v215_v8 = vand.u32 2147483647, %v976_v4  ;;  %vm217_vm12 = vcmp.lt.s32.totalorder %v976_v4, 0 }
  0x92   : > { %v219_v6 = vshrl.u32 %v218_v5, 23  ;;  %v222_v10 = vand.u32 8388607, %v215_v8  ;;  %vm216_vm13 = vcmp.le.f32.partialorder %v215_v8, 0.7853982 }
  0x94   : > { %v690_v7 = vadd.s32 4294967169, %v219_v6  ;;  %v223_v14 = vor.u32 8388608, %v222_v10 }
  0x96   : > { %v225_v9 = vadd.s32 1, %v690_v7  ;;  %v993_v37 = vshll.u32 %v223_v14, 8 }
  0x98   : > { %vm226_vm0 = vcmp.gt.s32.totalorder %v225_v9, 0  ;;  %v264_v46 = vand.u32 65535, %v993_v37  ;;  %v265_v51 = vshrl.u32 %v993_v37, 16 }
  0x99   : > { %v227_v11 = vsel %vm226_vm0, %v225_v9, 0 }
  0x9a   : > { %v229_v12 = vand.u32 31, %v227_v11  ;;  %v984_v15 = vshrl.u32 %v227_v11, 5 }
  0x9c   : > { %v982_v13 = vsub.s32 32, %v229_v12  ;;  %v232_v17 = vshll.u32 %v885_v16, %v229_v12  ;;  %v235_v19 = vshll.u32 %v886_v18, %v229_v12  ;;  %v238_v23 = vshll.u32 %v887_v21, %v229_v12 }
  0x9d   : > { %v241_v26 = vshll.u32 %v888_v24, %v229_v12  ;;  %v244_v29 = vshll.u32 %v889_v27, %v229_v12  ;;  %vm247_vm1 = vcmp.lt.s32.totalorder %v984_v15, 1  ;;  %vm250_vm2 = vcmp.lt.s32.totalorder %v984_v15, 4 }
  0x9e   : > { %v233_v20 = vshrl.u32 %v886_v18, %v982_v13  ;;  %v236_v22 = vshrl.u32 %v887_v21, %v982_v13  ;;  %v239_v25 = vshrl.u32 %v888_v24, %v982_v13  ;;  %v242_v28 = vshrl.u32 %v889_v27, %v982_v13 }
  0x9f   : > { %v245_v31 = vshrl.u32 %v890_v30, %v982_v13  ;;  %vm249_vm3 = vcmp.lt.s32.totalorder %v984_v15, 3  ;;  %vm248_vm4 = vcmp.lt.s32.totalorder %v984_v15, 2  ;;  %v231_v10 = vshrl.u32 %v885_v16, %v982_v13 }
  0xa0   : > { %v234_v32 = vor.u32 %v233_v20, %v232_v17  ;;  %v237_v33 = vor.u32 %v236_v22, %v235_v19  ;;  %v240_v34 = vor.u32 %v239_v25, %v238_v23  ;;  %v243_v35 = vor.u32 %v242_v28, %v241_v26 }
  0xa1   : > { %v246_v36 = vor.u32 %v245_v31, %v244_v29 }
  0xa2   : > { %v255_v38 = vsel %vm247_vm1, %v234_v32, %v237_v33  ;;  %v259_v39 = vsel %vm247_vm1, %v237_v33, %v240_v34  ;;  %v256_v40 = vsel %vm250_vm2, %v243_v35, 920167782  ;;  %v252_v3 = vsel %vm250_vm2, %v240_v34, 2102212464 }
  0xa3   : > { %v260_v41 = vsel %vm250_vm2, %v246_v36, 1326507024  ;;  %v257_v42 = vsel %vm249_vm3, %v240_v34, %v256_v40  ;;  %v251_v20 = vsel %vm247_vm1, %v231_v10, %v234_v32  ;;  %v253_v21 = vsel %vm249_vm3, %v237_v33, %v252_v3 }
  0xa4   : > { %v261_v43 = vsel %vm249_vm3, %v243_v35, %v260_v41  ;;  %v258_v44 = vsel %vm248_vm4, %v255_v38, %v257_v42  ;;  %v254_v13 = vsel %vm248_vm4, %v251_v20, %v253_v21 }
  0xa5   : > { %v262_v45 = vsel %vm248_vm4, %v259_v39, %v261_v43  ;;  %v288_v49 = vand.u32 65535, %v258_v44  ;;  %v289_v50 = vshrl.u32 %v258_v44, 16  ;;  %v308_v28 = vmul.u32 %v993_v37, %v254_v13 }
  0xa6   : > { %v266_v47 = vand.u32 65535, %v262_v45  ;;  %v267_v48 = vshrl.u32 %v262_v45, 16  ;;  %vm358_vm4 = vweird.f32 %v976_v4 }
  0xa7   : > { %v291_v53 = vmul.u32 %v289_v50, %v264_v46  ;;  %v292_v55 = vmul.u32 %v288_v49, %v265_v51  ;;  %v290_v58 = vmul.u32 %v288_v49, %v264_v46  ;;  %v293_v61 = vmul.u32 %v289_v50, %v265_v51 }
  0xa8   : > { %v269_v52 = vmul.u32 %v267_v48, %v264_v46  ;;  %v270_v54 = vmul.u32 %v266_v47, %v265_v51  ;;  %v268_v56 = vmul.u32 %v266_v47, %v264_v46  ;;  %v271_v60 = vmul.u32 %v267_v48, %v265_v51 }
  0xa9   : > { %v294_v59 = vshll.u32 %v291_v53, 16  ;;  %v296_v63 = vshll.u32 %v292_v55, 16  ;;  %v295_v18 = vshrl.u32 %v291_v53, 16  ;;  %v297_v24 = vshrl.u32 %v292_v55, 16 }
  0xaa   : > { %v272_v57 = vshll.u32 %v269_v52, 16  ;;  %v274_v62 = vshll.u32 %v270_v54, 16  ;;  %v273_v14 = vshrl.u32 %v269_v52, 16  ;;  %v275_v22 = vshrl.u32 %v270_v54, 16 }
  0xab   : > { %vm298_vm6 = vc.u32 %v290_v58, %v294_v59  ;;  %v300_v2 = vadd.s32 %v294_v59, %v290_v58 }
  0xac   : > { %vm276_vm5 = vc.u32 %v268_v56, %v272_v57  ;;  %v278_v1 = vadd.s32 %v272_v57, %v268_v56  ;;  %v299_v6 = vsel %vm298_vm6, 1, %v884_v0  ;;  %vm532_vm6 = vcmask 261120  }
  0xad   : > { %v277_v5 = vsel %vm276_vm5, 1, %v884_v0  ;;  %v301_v9 = vadd.s32 %v299_v6, %v293_v61  ;;  %vm302_vm8 = vc.u32 %v300_v2, %v296_v63  ;;  %v304_v26 = vadd.s32 %v300_v2, %v296_v63 }
  0xae   : > { %v279_v7 = vadd.s32 %v277_v5, %v271_v60  ;;  %vm280_vm7 = vc.u32 %v278_v1, %v274_v62  ;;  %v303_v12 = vsel %vm302_vm8, 1, %v884_v0  ;;  %vm530_vm5 = vcmask 130048  }
  0xaf   : > { %v281_v11 = vsel %vm280_vm7, 1, %v884_v0  ;;  %v305_v19 = vadd.s32 %v303_v12, %v301_v9 }
  0xb0   : > { %v283_v17 = vadd.s32 %v281_v11, %v279_v7 }
  0xb1   : > { %v306_v25 = vadd.s32 %v305_v19, %v295_v18 }
  0xb2   : > { %v284_v23 = vadd.s32 %v283_v17, %v273_v14 }
  0xb3   : > { %v307_v0 = vadd.s32 %v306_v25, %v297_v24 }
  0xb4   : > { %v285_v16 = vadd.s32 %v284_v23, %v275_v22 }
  0xb5   : > { %v311_v27 = vadd.s32 1, %v307_v0 }
  0xb6   : > { %vm310_vm9 = vc.u32 %v285_v16, %v304_v26  ;;  %v309_v40 = vadd.s32 %v304_v26, %v285_v16 }
  0xb7   : > { %v312_v29 = vsel %vm310_vm9, %v311_v27, %v307_v0 }
  0xb8   : > { %v313_v30 = vadd.s32 %v312_v29, %v308_v28 }
  0xba   : > { %v314_v31 = vadd.s32 536870912, %v313_v30 }
  0xbc   : > { %v315_v32 = vshrl.u32 %v314_v31, 30 }
  0xbe   : > { %v316_v34 = vshll.u32 %v315_v32, 30  ;;  %v339_v53 = vsub.s32 4, %v315_v32 }
  0xc0   : > { %v317_v33 = vsub.s32 %v313_v30, %v316_v34  ;;  %v340_v58 = vsel %vm217_vm12, %v339_v53, %v315_v32 }
  0xc1   : > { %v342_v61 = vsel %vm216_vm13, 0, %v340_v58 }
  0xc2   : > { %vm318_vm10 = vcmp.lt.s32.totalorder %v317_v33, 0  ;;  %v319_v35 = vsub.s32 0, %v317_v33  ;;  %v513_v3 = vadd.s32 3, %v342_v61  ;;  %v359_v9 = vand.u32 3, %v342_v61 }
  0xc4   : > { %v320_v36 = vsel %vm318_vm10, %v319_v35, %v317_v33  ;;  %v514_v10 = vand.u32 3, %v513_v3  ;;  %vm360_vm14 = vcmp.lt.s32.totalorder %v359_v9, 2  ;;  %vm361_vm15 = vcmp.eq.s32.totalorder %v359_v9, 0 }
  0xc5   : > { %v321_v38 = vclz %v320_v36  ;;  %vm364_vm0 = vcmp.eq.s32.totalorder %v359_v9, 2 }
  0xc6   : > { %vm515_vm1 = vcmp.lt.s32.totalorder %v514_v10, 2  ;;  %vm516_vm2 = vcmp.eq.s32.totalorder %v514_v10, 0  ;;  %vm519_vm3 = vcmp.eq.s32.totalorder %v514_v10, 2 }
  0xc7   : > { %v691_v39 = vadd.s32 4294967294, %v321_v38 }
  0xc9   : > { %vm692_vm11 = vcmp.lt.s32.totalorder %v691_v39, 0 }
  0xca   : > { %v324_v15 = vsel %vm692_vm11, 0, %v691_v39 }
  0xcb   : > { %v325_v41 = vsub.s32 32, %v324_v15  ;;  %v329_v42 = vsub.s32 4294967266, %v324_v15  ;;  %v326_v43 = vshll.u32 %v317_v33, %v324_v15 }
  0xcd   : > { %v327_v44 = vshrl.u32 %v309_v40, %v325_v41  ;;  %v330_v45 = vadd.s32 127, %v329_v42 }
  0xcf   : > { %v328_v37 = vor.u32 %v327_v44, %v326_v43  ;;  %v331_v46 = vshll.u32 %v330_v45, 23 }
  0xd1   : > { %v332_v47 = vor.u32 4788187, %v331_v46  ;;  %v335_v49 = vcvt.s32.f32 %v328_v37 }
  0xd3   : > { %v333_v48 = vand.u32 2147483647, %v332_v47 }
  0xd5   : > { %v336_v50 = vmul.f32 %v335_v49, %v333_v48 }
  0xd7   : > { %v337_v51 = vxor.u32 2147483648, %v336_v50 }
  0xd9   : > { %v338_v52 = vsel %vm217_vm12, %v337_v51, %v336_v50 }
  0xda   : > { %v341_v54 = vsel %vm216_vm13, %v976_v4, %v338_v52 }
  0xdb   : > { %v343_v55 = vmul.f32 %v341_v54, %v341_v54 }
  0xdd   : > { %v344_v56 = vmul.f32 -0.001358992, %v343_v55  ;;  %v351_v57 = vmul.f32 -0.00019511016, %v343_v55 }
  0xdf   : > { %v345_v59 = vadd.f32 0.041655596, %v344_v56  ;;  %v352_v60 = vadd.f32 0.008332121, %v351_v57 }
  0xe1   : > { %v346_v62 = vmul.f32 %v345_v59, %v343_v55  ;;  %v353_v63 = vmul.f32 %v352_v60, %v343_v55 }
  0xe3   : > { %v347_v1 = vadd.f32 -0.4999988, %v346_v62  ;;  %v354_v2 = vadd.f32 -0.16666654, %v353_v63 }
  0xe5   : > { %v348_v5 = vmul.f32 %v347_v1, %v343_v55  ;;  %v355_v6 = vmul.f32 %v354_v2, %v343_v55 }
  0xe7   : > { %v349_v7 = vadd.f32 1.0, %v348_v5  ;;  %v356_v8 = vadd.f32 1.0, %v355_v6 }
  0xe9   : > { %v357_v11 = vmul.f32 %v356_v8, %v341_v54  ;;  %v365_v12 = vxor.u32 2147483648, %v349_v7 }
  0xeb   : > { %v362_v14 = vxor.u32 2147483648, %v357_v11  ;;  %v521_v18 = vsel %vm519_vm3, %v365_v12, %v357_v11  ;;  %v366_v20 = vsel %vm364_vm0, %v365_v12, %v357_v11 }
  0xed   : > { %v518_v17 = vsel %vm516_vm2, %v349_v7, %v362_v14  ;;  %v363_v19 = vsel %vm361_vm15, %v349_v7, %v362_v14 }
  0xee   : > { %v522_v21 = vsel %vm515_vm1, %v518_v17, %v521_v18  ;;  %v367_v22 = vsel %vm360_vm14, %v363_v19, %v366_v20 }
  0xef   : > { %v523_v23 = vsel %vm358_vm4, nan, %v522_v21  ;;  %v368_v24 = vsel %vm358_vm4, nan, %v367_v22 }
  0xf0   : > { %v525_v25 = vmul.f32 1.040833, %v523_v23  ;;  %v524_v13 = vmul.f32 1.040833, %v368_v24 }
  0xf2   : > { %535 = vrot.lane.b32.xlu1 %v525_v25, %s891_s6  ;;  %527 = vrot.lane.b32.xlu0 %v524_v13, %s891_s6  ;;  %s788_s6 = scalar_lea.hbm %s787_s5, 8 }
  0xf3   : > { %p789_p12 = scmp.ne.s32.totalorder %s787_s5, %s788_s6  ;;  %p794_p2 = scmp.lt.s32.totalorder %s792_s10, %s788_s6 }
  0xf5   : > { %p790_p13 = pnand %p789_p12, %p952_p4  ;;  %p795_p3 = por %p794_p2, %p793_p1 }
  0xf7   : > { %p791_p0 = pneg %p790_p13 }
  0xf9   : > { %p796_p5 = pnand %p795_p3, %p791_p0 }
 0x164   : > { %v536_v4 = vpop.permute.xlu1 %535  ;;  %v528_v16 = vpop.permute.xlu0 %527 }
 0x165   : > { %v538_v26 = vsel %vm530_vm5, %v525_v25, %v536_v4  ;;  %v531_v0 = vsel %vm530_vm5, %v524_v13, %v528_v16 }
 0x166   : > { %533 = vst.msk [vmem:[%s189_s26] sm:$0xff] %vm532_vm6, %v531_v0 }
 0x167   : > { %799 = shalt.err (!%p796_p5)
}
 0x168   : > { %702 = dma.vmem_to_hbm [thread:$0]  (%p952_p4), %s560_s27, 128, %s562_s28, %s541_s15   ;;  %539 = vst.msk [vmem:[%s196_s29] sm:$0xff] %vm532_vm6, %v538_v26 }
 0x169   : > { %s546_s19 = scalar_lea.sflag [#allocation5], %s1037_s7  ;;  %s814_s21 = sshra.s32 %s1049_s4, 4  ;;  %s815_s21 = int_to_ptr.hbm [resolvable:$true] %s814_s21 }
 0x16a   : > { %s816_s23 = scalar_lea.hbm %s815_s21, 8  ;;  %s820_s6 = scalar_lea.hbm %s1103_s3, 16 }
 0x16b   : > { %p817_p6 = scmp.ne.s32.totalorder %s815_s21, %s816_s23  ;;  %p821_p10 = scmp.lt.s32.totalorder %s815_s21, %s1103_s3 }
 0x16c   : > { %p822_p11 = scmp.lt.s32.totalorder %s820_s6, %s816_s23 }
 0x16d   : > { %p818_p7 = pnand %p817_p6, %p952_p4 }
 0x16e   : > { %p823_p12 = por %p822_p11, %p821_p10 }
 0x16f   : > { %p819_p9 = pneg %p818_p7 }
 0x171   : > { %p824_p13 = pnand %p823_p12, %p819_p9 }
 0x173   : > { %827 = shalt.err (!%p824_p13)
}
 0x174   : > { %703 = dma.vmem_to_hbm [thread:$0]  (%p952_p4), %s1047_s30, 128, %s1049_s4, %s546_s19  }
 0x175 PF: > { %p713_p0 = scmp.ge.s32.totalorder %s882_s17, 2  ;;  %s588_s7 = sand.u32 1, %s862_s12  }
 0x176   : > { %s589_s27 = scalar_lea.sflag [#allocation3], %s588_s7 }
 0x177   : > { %p707_p1 = pnand %p713_p0, %p959_p8 }
 0x179   : > { %p708_p2 = pneg %p707_p1 }
 0x17b   : > { %853 = dma.done.wait (%p708_p2), %s589_s27, 128  }
 0x17c   : > { %855 = vsyncadd (%p708_p2), %s589_s27, 4294967168  ;;  %s599_s28 = scalar_lea.sflag [#allocation5], %s588_s7 }
 0x17d   : > { %857 = dma.done.wait (%p708_p2), %s599_s28, 128  }
 0x17e   : > { %859 = vsyncadd (%p708_p2), %s599_s28, 4294967168  ;;  %s20_s17 = sadd.s32 1, %s882_s17   ;;  %s1106_s12 = smov %s866_s13 }
 0x17f   : > { %p17_p3 = scmp.ge.s32.totalorder %s20_s17, 4   ;;  %s1107_s13 = smov %s870_s14 }
 0x180   : > { %s1108_s14 = smov %s965_s25  ;;  %s1109_s15 = smov %s878_s16 }
 0x181   : > { %s1110_s16 = smov %s1112_s20  ;;  %19 = sbr.rel (!%p17_p3) target bundleno = 6 (0x6), region = 80 }
 0x186   :  { %605 = vsyncpa [#allocation3], 1 }
 0x187   :  { %607 = vsyncpa [#allocation3 + $0x1], 1 }
 0x188   :  { %608 = vsyncpa [#allocation5], 1 }
 0x189   :  { %610 = vsyncpa [#allocation5 + $0x1], 1 }

</bundles_post_ra>
